<compile_context>
chip_gen: v6e
topology: v6e:2x2x1
jax: 0.10.0
libtpu: 0.0.40
codegen_flags: <defaults>
</compile_context>

<pallas_src>
import functools

import jax
import jax.numpy as jnp
from jax.experimental import pallas as pl
from jax.experimental.pallas import tpu as pltpu

_LANE = 128


def _normalize_kernel(x_ref, o_ref, *, p, eps):
    # x_ref / o_ref block: (TILE_N, C, TILE_HW); reduction is over axis 1 only,
    # so every (n, hw) lane column is independent (padded edge columns/rows are
    # garbage-in / garbage-out and their stores are masked by Pallas).
    v = x_ref[...].astype(jnp.float32)

    if p == 2:
        sumsq = jnp.sum(v * v, axis=1, keepdims=True)                   # (TN,1,THW)
        # max(sqrt(s), eps) == sqrt(max(s, eps^2)); fuse into a single rsqrt.
        inv = jax.lax.rsqrt(jnp.maximum(sumsq, jnp.float32(eps) ** 2))
    elif p == 1:
        norm = jnp.sum(jnp.abs(v), axis=1, keepdims=True)
        inv = pl.reciprocal(jnp.maximum(norm, eps), approx=False)
    elif float(p) == int(p) and int(p) > 0:
        # small integer p: repeated VPU multiplies, single per-column root
        ip = int(p)
        a = jnp.abs(v)
        pw = a
        for _ in range(ip - 1):
            pw = pw * a
        norm = jnp.power(jnp.sum(pw, axis=1, keepdims=True), 1.0 / ip)
        inv = pl.reciprocal(jnp.maximum(norm, eps), approx=False)
    else:
        # general (non-integer) p: transcendental path, only used when required
        norm = jnp.power(
            jnp.sum(jnp.power(jnp.abs(v), p), axis=1, keepdims=True), 1.0 / p)
        inv = pl.reciprocal(jnp.maximum(norm, eps), approx=False)

    # One rsqrt/reciprocal per lane column, broadcast VPU multiply across C.
    o_ref[...] = (v * inv).astype(o_ref.dtype)


def normalize(x, p=2, dim=1, eps=1e-8, *,
              max_block_bytes=4 * 1024 * 1024,
              vmem_limit_bytes=48 * 1024 * 1024):
    """Pallas equivalent of F.normalize(x, p, dim, eps) for NCHW inputs, dim=1."""
    assert dim == 1, "kernel implements the module default dim=1 (channel)"
    N, C, H, W = x.shape
    HW = H * W
    # Pure metadata reshape (row-major contiguous): no HBM traffic.
    x3 = x.reshape(N, C, HW)

    itemsize = jnp.dtype(x.dtype).itemsize
    c_pad = max(8, ((C + 7) // 8) * 8)                 # sublane padding of C in VMEM
    hw_128 = ((HW + _LANE - 1) // _LANE) * _LANE       # lane padding of HW in VMEM
    # Lane columns per batch row that fit the per-block budget (input itemsize).
    budget_cols = max(_LANE,
                      (max_block_bytes // (c_pad * itemsize)) // _LANE * _LANE)

    kernel = functools.partial(_normalize_kernel, p=p, eps=eps)
    cost = pl.CostEstimate(
        flops=3 * N * C * HW,            # square + accumulate + final scale
        transcendentals=N * HW,          # one rsqrt per lane column
        bytes_accessed=2 * N * C * HW * itemsize)

    if hw_128 <= budget_cols:
        # Small spatial extent: keep full HW in-block and pack batch rows so
        # each grid step still moves a large DMA.
        tile_n = min(max(1, budget_cols // hw_128), N)
        if tile_n == N and N > 1:
            tile_n = (N + 1) // 2        # keep >= 2 blocks so both v7x TCs work
        grid = (pl.cdiv(N, tile_n),)
        block = (tile_n, C, HW)
        index_map = lambda i: (i, 0, 0)
        semantics = ("parallel",)
    else:
        # Large spatial extent: lane-dense HW tiles (multiple of 128); the
        # ragged edge block (if HW % tile_hw != 0) is masked by Pallas.
        tile_hw = budget_cols
        grid = (N, pl.cdiv(HW, tile_hw))
        block = (1, C, tile_hw)
        index_map = lambda i, j: (i, 0, j)
        semantics = ("parallel", "parallel")

    out3 = pl.pallas_call(
        kernel,
        out_shape=jax.ShapeDtypeStruct((N, C, HW), x.dtype),
        grid_spec=pltpu.PrefetchScalarGridSpec(
            num_scalar_prefetch=0,
            grid=grid,
            in_specs=[pl.BlockSpec(block, index_map)],
            out_specs=pl.BlockSpec(block, index_map),
        ),
        compiler_params=pltpu.CompilerParams(
            dimension_semantics=semantics,
            vmem_limit_bytes=vmem_limit_bytes),
        cost_estimate=cost,
    )(x3)

    return out3.reshape(N, C, H, W)


def _ref_normalize(x, p=2, eps=1e-8):
    norm = jnp.power(jnp.sum(jnp.power(jnp.abs(x), p), axis=1, keepdims=True), 1.0 / p)
    return x / jnp.maximum(norm, eps)


if __name__ == "__main__":
    key = jax.random.PRNGKey(0)

    # Shape implied by the module defaults (NCHW, channel norm): 128-aligned HW.
    x = jax.random.normal(key, (2, 4, 16, 16), dtype=jnp.float32)
    out = normalize(x, p=2, dim=1, eps=1e-8)
    jax.block_until_ready(out)
    assert jnp.allclose(out, _ref_normalize(x, p=2), atol=1e-6, rtol=1e-5), \
        "mismatch vs reference (p=2, 16x16, N-packed path)"

    # Non-multiple-of-128 spatial size: full HW kept in-block, no padding at all.
    x2 = jax.random.normal(jax.random.PRNGKey(1), (2, 4, 14, 14), dtype=jnp.float32)
    out2 = normalize(x2, p=2, dim=1, eps=1e-8)
    jax.block_until_ready(out2)
    assert jnp.allclose(out2, _ref_normalize(x2, p=2), atol=1e-6, rtol=1e-5), \
        "mismatch vs reference (p=2, 14x14, N-packed path)"

    # Force the HW-tiled path with a ragged (masked) edge block by shrinking the
    # per-block budget: HW=400 -> grid=(N, 4) with tile_hw=128.
    x3 = jax.random.normal(jax.random.PRNGKey(2), (2, 4, 20, 20), dtype=jnp.float32)
    out3 = normalize(x3, p=2, dim=1, eps=1e-8, max_block_bytes=4096)
    jax.block_until_ready(out3)
    assert jnp.allclose(out3, _ref_normalize(x3, p=2), atol=1e-6, rtol=1e-5), \
        "mismatch vs reference (p=2, 20x20, ragged HW-tiled path)"

    print("KERNEL_OK")
</pallas_src>

<mosaic_0001>
module attributes {stable_mosaic.version = 11 : i64} {
  func.func @_normalize_kernel(%arg0: i32, %arg1: memref<1x4x256xf32, #tpu.memory_space<vmem>>, %arg2: memref<1x4x256xf32, #tpu.memory_space<vmem>>) attributes {dimension_semantics = [#tpu.dimension_semantics<parallel>], iteration_bounds = array<i64: 2>, scalar_prefetch = 0 : i64, scratch_operands = 0 : i64, tpu.core_type = #tpu.core_type<tc>, window_params = [{transform_indices = @transform_0, window_bounds = array<i64: 1, 4, 256>}, {transform_indices = @transform_1, window_bounds = array<i64: 1, 4, 256>}]} {
    %c0 = arith.constant 0 : index
    %c0_0 = arith.constant 0 : index
    %c0_1 = arith.constant 0 : index
    %0 = vector.load %arg1[%c0, %c0_0, %c0_1] : memref<1x4x256xf32, #tpu.memory_space<vmem>>, vector<1x4x256xf32>
    %1 = arith.mulf %0, %0 : vector<1x4x256xf32>
    %cst = arith.constant dense<0.000000e+00> : vector<1x256xf32>
    %2 = vector.multi_reduction <add>, %1, %cst [1] : vector<1x4x256xf32> to vector<1x256xf32>
    %3 = vector.shape_cast %2 : vector<1x256xf32> to vector<1x1x256xf32>
    %cst_2 = arith.constant 9.99999993E-9 : f32
    %4 = arith.mulf %cst_2, %cst_2 : f32
    %5 = vector.broadcast %4 : f32 to vector<1x1x256xf32>
    %6 = arith.maximumf %3, %5 : vector<1x1x256xf32>
    %7 = math.rsqrt %6 : vector<1x1x256xf32>
    %8 = vector.broadcast %7 : vector<1x1x256xf32> to vector<1x4x256xf32>
    %9 = arith.mulf %0, %8 : vector<1x4x256xf32>
    %c0_3 = arith.constant 0 : index
    %c0_4 = arith.constant 0 : index
    %c0_5 = arith.constant 0 : index
    %10 = vector.load %arg2[%c0_3, %c0_4, %c0_5] : memref<1x4x256xf32, #tpu.memory_space<vmem>>, vector<1x4x256xf32>
    tpu.vector_store %arg2[%c0_3, %c0_4, %c0_5], %9 {strides = array<i32>} : memref<1x4x256xf32, #tpu.memory_space<vmem>>, vector<1x4x256xf32>,
    return
  }
  func.func @transform_0(%arg0: i32) -> (i32, i32, i32) {
    %c0_i32 = arith.constant 0 : i32
    %c0_i32_0 = arith.constant 0 : i32
    %c0_i32_1 = arith.constant 0 : i32
    return %arg0, %c0_i32, %c0_i32_0 : i32, i32, i32
  }
  func.func @transform_1(%arg0: i32) -> (i32, i32, i32) {
    %c0_i32 = arith.constant 0 : i32
    %c0_i32_0 = arith.constant 0 : i32
    %c0_i32_1 = arith.constant 0 : i32
    return %arg0, %c0_i32, %c0_i32_0 : i32, i32, i32
  }
}

</mosaic_0001>

<bundles_post_ra>
// kernel: tpu_custom_call.1
= control target key start
LH: loop header
LB: loop body
LE: loop exit
PB: predicated region body
PF: predicated region fallthrough
CT: control target
= control target key end

     0   :  { %6 = vsyncpa [#allocation3], 0  ;;  %s561_s0 = inlined_call_operand.hbm [shape: f32[2,4,256], index: 0, kind: input, shape index: {}]   ;;  %s562_s1 = inlined_call_operand.hbm [shape: f32[2,4,256], index: 1, kind: output, shape index: {}]  }
   0x1   :  { %8 = vsyncpa [#allocation3 + $0x1], 0 }
   0x2   :  { %9 = vsyncpa [#allocation4], 0 }
   0x3   :  { %11 = vsyncpa [#allocation4 + $0x1], 0  ;;  %s420_s6 = smov 0   ;;  %s422_s7 = smov 0  }
   0x4   :  { %s424_s8 = smov 0   ;;  %s426_s9 = smov 0  }
   0x5 LB: > { %s441_s10 = sadd.s32 4294967295, %s406_s9   ;;  %s248_s11 = sadd.s32 4294967294, %s406_s9   ;;  %s406_s9 = sphi %s426_s9, %s579_s9   ;;  %s402_s8 = sphi %s424_s8, %s578_s8   ;;  %s398_s7 = sphi %s422_s7, %s577_s7   ;;  %s394_s6 = sphi %s420_s6, %s576_s6  }
   0x6   : > { %s445_s12 = sadd.s32 1, %s406_s9   ;;  %s24_s13 = sadd.s32 1, %s402_s8 }
   0x7   : > { %s21_s14 = ssub.s32 %s406_s9, %s445_s12  ;;  %p31_p0 = scmp.ne.s32.totalorder %s402_s8, %s398_s7 }
   0x8   : > { %p22_p1 = scmp.eq.s32.totalorder %s21_s14, 0  ;;  %p32_p2 = scmp.eq.s32.totalorder %s406_s9, 0 }
   0x9   : > { %p37_p3 = scmp.ne.s32.totalorder %s398_s7, %s394_s6  ;;  %p38_p4 = scmp.eq.s32.totalorder %s441_s10, 0 }
   0xa   : > { %s457_s15 = scalar_select %p22_p1, %s402_s8, %s24_s13  }
   0xb   : > { %p459_p5 = por %p32_p2, %p31_p0  ;;  %p463_p6 = por %p38_p4, %p37_p3 }
   0xc   : > { %p61_p7 = scmp.eq.s32.totalorder %s441_s10, 1  ;;  %p67_p8 = scmp.eq.s32.totalorder %s248_s11, 1 }
   0xd   : > { %s566_s17 = scalar_select %p463_p6, 1, 0 }
   0xe   : > { %p276_p10 = scmp.lt.s32.totalorder %s406_s9, 2  ;;  %p470_p11 = por %p61_p7, %p31_p0 }
   0xf   : > { %p474_p12 = por %p67_p8, %p37_p3  ;;  %s87_s20 = sand.u32 1, %s402_s8  }
  0x10   : > { %s567_s18 = scalar_select %p470_p11, 1, 0 }
  0x11   : > { %s568_s19 = scalar_select %p474_p12, 1, 0 }
  0x12   : > { %s262_s21 = sshll.u32 %s406_s9, 7  ;;  %s251_s22 = sshll.u32 %s87_s20, 3 }
  0x13   : > { %s483_s25 = scalar_lea.hbm %s561_s0, %s262_s21  ;;  %s91_s26 = scalar_lea.vmem [#allocation2], %s251_s22 }
  0x14   : > { %s99_s27 = sshll.u32 %s91_s26, 4  ;;  %p487_p13 = pnand %p276_p10, %p459_p5  ;;  %s491_s27 = int_to_ptr.vmem [resolvable:$true] %s99_s27 }
  0x15   : > { %s88_s29 = scalar_lea.sflag [#allocation3], %s87_s20  ;;  %s314_s30 = scalar_lea.hbm %s483_s25, 128 }
  0x16   : > { %p315_p2 = scmp.ne.s32.totalorder %s483_s25, %s314_s30  ;;  %p316_p3 = pneg %p487_p13 }
  0x17   : > { %s319_s4 = scalar_lea.hbm %s561_s0, 256  ;;  %p320_p5 = scmp.lt.s32.totalorder %s483_s25, %s561_s0 }
  0x18   : > { %p317_p4 = pnand %p316_p3, %p315_p2  ;;  %p321_p8 = scmp.lt.s32.totalorder %s319_s4, %s314_s30 }
  0x1a   : > { %p318_p7 = pneg %p317_p4  ;;  %p322_p10 = por %p321_p8, %p320_p5 }
  0x1c   : > { %p323_p9 = pnand %p322_p10, %p318_p7 }
  0x1e   : > { %326 = shalt.err (!%p323_p9)
}
  0x1f   : > { %s327_s13 = scalar_lea.vmem %s491_s27, 128  ;;  %s408_s14 = smov [#allocation2]  }
  0x20   : > { %p328_p0 = scmp.ne.s32.totalorder %s491_s27, %s327_s13  ;;  %s332_s16 = sshll.u32 %s408_s14, 4  ;;  %s333_s16 = int_to_ptr.vmem [resolvable:$false] %s332_s16 }
  0x21   : > { %s334_s20 = scalar_lea.vmem %s333_s16, 256  ;;  %p335_p4 = scmp.lt.s32.totalorder %s491_s27, %s333_s16 }
  0x22   : > { %p330_p1 = pnand %p328_p0, %p316_p3  ;;  %p336_p12 = scmp.lt.s32.totalorder %s334_s20, %s327_s13 }
  0x24   : > { %p331_p2 = pneg %p330_p1  ;;  %p337_p11 = por %p336_p12, %p335_p4 }
  0x26   : > { %p338_p6 = pnand %p337_p11, %p331_p2 }
  0x28   : > { %341 = shalt.err (!%p338_p6)
}
  0x29   : > { %271 = dma.hbm_to_vmem [thread:$0]  (!%p487_p13), %s483_s25, 128, %s491_s27, %s88_s29  }
  0x2a   : > { %p570_p9 = scmp.lt.s32.totalorder %s406_s9, 3  ;;  %p571_p7 = scmp.ge.s32.totalorder %s406_s9, 1 }
  0x2c   : > { %p105_p0 = pnand %p571_p7, %p570_p9 }
  0x2d   : > { %s518_s21 = sand.u32 (!%p105_p0), 1, %s398_s7   ;;  %p572_p6 = scmp.ne.s32.totalorder (!%p105_p0), %s566_s17, 0 }
  0x2e   : > { %108 = sbr.rel (%p105_p0) target bundleno = 103 (0x67), region = 24  ;;  %s255_s22 = sshll.u32 (!%p105_p0), %s518_s21, 3 }
  0x2f   : > { %s111_s23 = scalar_lea.sflag (!%p105_p0), [#allocation3], %s518_s21  ;;  %s114_s24 = scalar_lea.vmem (!%p105_p0), [#allocation2], %s255_s22 }
  0x33   : > { %385 = dma.done.wait (%p572_p6), %s111_s23, 128  }
  0x34   : > { %387 = vsyncadd (%p572_p6), %s111_s23, 4294967168  ;;  %v133_v0 = vld [vmem:[%s114_s24] sm:$0xff]  ;;  %vm138_vm0 = vcmask 1043456   ;;  %s132_s17 = scalar_lea.vmem [#allocation5], %s255_s22  ;;  %s263_s26 = sshll.u32 %s441_s10, 7 }
  0x35   : > { %v134_v1 = vmul.f32 %v133_v0, %v133_v0  ;;  %s178_s25 = sshll.u32 %s132_s17, 4  ;;  %s176_s29 = scalar_lea.hbm %s562_s1, %s263_s26  ;;  %s179_s25 = int_to_ptr.vmem [resolvable:$true] %s178_s25 }
  0x36   : > { %s164_s30 = scalar_lea.sflag [#allocation4], %s518_s21  ;;  %s342_s2 = scalar_lea.vmem %s179_s25, 128 }
  0x37   : > { %v136_v2 = vcombine.high %v134_v1, %v134_v1  ;;  %v139_v3 = vsel %vm138_vm0, %v134_v1, 0.0  ;;  %p343_p11 = scmp.ne.s32.totalorder %s179_s25, %s342_s2  ;;  %p573_p12 = scmp.ne.s32.totalorder %s567_s18, 0 }
  0x38   : > { %v140_v4 = vrot.slane %v139_v3, 4  ;;  %s409_s3 = smov [#allocation5]  }
  0x39   : > { %v146_v5 = vsel %vm138_vm0, %v136_v2, 0.0  ;;  %p344_p13 = pnand %p343_p11, %p573_p12  ;;  %s346_s4 = sshll.u32 %s409_s3, 4  ;;  %s347_s4 = int_to_ptr.vmem [resolvable:$false] %s346_s4 }
  0x3a   : > { %v141_v6 = vadd.f32 %v140_v4, %v139_v3  ;;  %v147_v7 = vrot.slane %v146_v5, 4  ;;  %s348_s5 = scalar_lea.vmem %s347_s4, 256  ;;  %p349_p3 = scmp.lt.s32.totalorder %s179_s25, %s347_s4 }
  0x3b   : > { %p345_p1 = pneg %p344_p13  ;;  %p350_p5 = scmp.lt.s32.totalorder %s348_s5, %s342_s2 }
  0x3c   : > { %v142_v8 = vrot.slane %v141_v6, 2  ;;  %v148_v9 = vadd.f32 %v147_v7, %v146_v5 }
  0x3d   : > { %p351_p8 = por %p350_p5, %p349_p3 }
  0x3e   : > { %v143_v10 = vadd.f32 %v142_v8, %v141_v6  ;;  %v149_v11 = vrot.slane %v148_v9, 2 }
  0x3f   : > { %p352_p10 = pnand %p351_p8, %p345_p1 }
  0x40   : > { %v144_v12 = vrot.slane %v143_v10, 1  ;;  %v150_v13 = vadd.f32 %v149_v11, %v148_v9 }
  0x42   : > { %v145_v14 = vadd.f32 %v144_v12, %v143_v10  ;;  %v151_v15 = vrot.slane %v150_v13, 1 }
  0x44   : > { %v152_v16 = vadd.f32 %v151_v15, %v150_v13  ;;  %v153_v17 = vmax.f32 %v145_v14, 1e-16 }
  0x46   : > { %v154_v18 = vmax.f32 %v152_v16, 1e-16  ;;  %310 = vrsqrt.f32 %v153_v17 }
  0x48   : > { %312 = vrsqrt.f32 %v154_v18 }
  0x53   : > { %v311_v19 = vpop.eup %310 }
  0x55   : > { %v313_v20 = vpop.eup %312 }
  0x56   : > { %v159_v21 = vcombine.low %v311_v19, %v313_v20 }
  0x58   : > { %v161_v22 = vmul.f32 %v159_v21, %v133_v0 }
  0x5a   : > { %162 = vst [vmem:[%s132_s17] sm:$0xff] %v161_v22 }
  0x5b   : > { %355 = shalt.err (!%p352_p10)
}
  0x5c   : > { %s356_s10 = scalar_lea.hbm %s176_s29, 128  ;;  %s360_s14 = scalar_lea.hbm %s562_s1, 256 }
  0x5d   : > { %p357_p2 = scmp.ne.s32.totalorder %s176_s29, %s356_s10  ;;  %p361_p7 = scmp.lt.s32.totalorder %s176_s29, %s562_s1 }
  0x5e   : > { %p362_p0 = scmp.lt.s32.totalorder %s360_s14, %s356_s10 }
  0x5f   : > { %p358_p4 = pnand %p357_p2, %p573_p12 }
  0x60   : > { %p363_p6 = por %p362_p0, %p361_p7 }
  0x61   : > { %p359_p9 = pneg %p358_p4 }
  0x63   : > { %p364_p11 = pnand %p363_p6, %p359_p9 }
  0x65   : > { %367 = shalt.err (!%p364_p11)
}
  0x66   : > { %266 = dma.vmem_to_hbm [thread:$0]  (%p573_p12), %s179_s25, 128, %s176_s29, %s164_s30  }
  0x67 PF: > { %s190_s21 = sand.u32 1, %s394_s6   ;;  %p574_p13 = scmp.ne.s32.totalorder %s568_s19, 0 }
  0x68   : > { %p575_p1 = scmp.ge.s32.totalorder %s406_s9, 2  ;;  %s191_s22 = scalar_lea.sflag [#allocation4], %s190_s21 }
  0x6a   : > { %p273_p3 = pnand %p575_p1, %p574_p13 }
  0x6c   : > { %p274_p5 = pneg %p273_p3 }
  0x6e   : > { %389 = dma.done.wait (%p274_p5), %s191_s22, 128  }
  0x6f   : > { %391 = vsyncadd (%p274_p5), %s191_s22, 4294967168  ;;  %p14_p8 = scmp.ge.s32.totalorder %s445_s12, 4   ;;  %s576_s6 = smov %s398_s7 }
  0x70   : > { %s577_s7 = smov %s402_s8  ;;  %s578_s8 = smov %s457_s15 }
  0x71   : > { %s579_s9 = smov %s445_s12  ;;  %16 = sbr.rel (!%p14_p8) target bundleno = 5 (0x5), region = 69 }
  0x76   :  { %196 = vsyncpa [#allocation3], 1 }
  0x77   :  { %198 = vsyncpa [#allocation3 + $0x1], 1 }
  0x78   :  { %199 = vsyncpa [#allocation4], 1 }
  0x79   :  { %201 = vsyncpa [#allocation4 + $0x1], 1 }

</bundles_post_ra>
